<compile_context>
chip_gen: v6e
topology: v6e:2x2x1
jax: 0.10.0
libtpu: 0.0.40
codegen_flags: <defaults>
</compile_context>

<pallas_src>
import functools

import jax
import jax.numpy as jnp
from jax.experimental import pallas as pl
from jax.experimental.pallas import tpu as pltpu

LANE = 128  # TPU native lane width


def _round_up(n, m):
    return ((n + m - 1) // m) * m


def _pad2(a, rows, cols):
    r, c = a.shape
    return jnp.pad(a, ((0, rows - r), (0, cols - c)))


def _make_kernel(target_size):
    def kernel(x_ref, w1_ref, b1_ref, w2_ref, b2_ref, w3_ref, b3_ref, o_ref):
        # Layer 1: Linear + ReLU (full (TB,128)x(128,128) MXU tile, f32 accumulate)
        h1 = jnp.dot(x_ref[...], w1_ref[...], preferred_element_type=jnp.float32) + b1_ref[...]
        h1 = jnp.maximum(h1, 0.0)
        # Layer 2: Linear + ReLU
        h2 = jnp.dot(h1, w2_ref[...], preferred_element_type=jnp.float32) + b2_ref[...]
        h2 = jnp.maximum(h2, 0.0)
        # Output layer: Linear + numerically-stable log_softmax over real lanes only.
        logits = jnp.dot(h2, w3_ref[...], preferred_element_type=jnp.float32) + b3_ref[...]
        lane_ok = jax.lax.broadcasted_iota(jnp.int32, logits.shape, 1) < target_size
        logits = jnp.where(lane_ok, logits, -jnp.inf)  # exclude padded columns
        m = jnp.max(logits, axis=-1, keepdims=True)
        z = logits - m
        lse = jnp.log(jnp.sum(jnp.exp(z), axis=-1, keepdims=True))  # exp(-inf)=0 on pads
        o_ref[...] = z - lse  # lane-dense (TB, 128) store; pads sliced off outside

    return kernel


def vanilla_net_forward(x, w1, b1, w2, b2, w3, b3, *, block_b=256):
    """x: (B, input_dim) f32. Weights (in, out), biases (1, out) or (out,).
    Returns log-probabilities (B, target_size) f32."""
    B, in_dim = x.shape
    h1_dim = w1.shape[1]
    h2_dim = w2.shape[1]
    t_dim = w3.shape[1]

    b1 = jnp.reshape(b1, (1, -1))
    b2 = jnp.reshape(b2, (1, -1))
    b3 = jnp.reshape(b3, (1, -1))

    # Pad every feature dim to the 128-lane native width (zero columns/rows are
    # inert through Linear+ReLU; output pads are masked in-kernel).
    in_p = _round_up(in_dim, LANE)
    h1_p = _round_up(h1_dim, LANE)
    h2_p = _round_up(h2_dim, LANE)
    t_p = _round_up(t_dim, LANE)

    w1p = _pad2(w1.astype(jnp.float32), in_p, h1_p)
    b1p = _pad2(b1.astype(jnp.float32), 1, h1_p)
    w2p = _pad2(w2.astype(jnp.float32), h1_p, h2_p)
    b2p = _pad2(b2.astype(jnp.float32), 1, h2_p)
    w3p = _pad2(w3.astype(jnp.float32), h2_p, t_p)
    b3p = _pad2(b3.astype(jnp.float32), 1, t_p)

    # Batch tile: multiple of 8 sublanes, capped so VMEM stays small on v7x.
    tb = min(block_b, _round_up(B, 8))
    tb = _round_up(tb, 8)
    b_p = _round_up(B, tb)
    xp = _pad2(x.astype(jnp.float32), b_p, in_p)

    n_blocks = pl.cdiv(b_p, tb)

    grid_spec = pltpu.PrefetchScalarGridSpec(
        num_scalar_prefetch=0,
        grid=(n_blocks,),
        in_specs=[
            pl.BlockSpec((tb, in_p), lambda i: (i, 0)),     # x: tiled over batch
            pl.BlockSpec((in_p, h1_p), lambda i: (0, 0)),   # weights/biases stay resident
            pl.BlockSpec((1, h1_p), lambda i: (0, 0)),
            pl.BlockSpec((h1_p, h2_p), lambda i: (0, 0)),
            pl.BlockSpec((1, h2_p), lambda i: (0, 0)),
            pl.BlockSpec((h2_p, t_p), lambda i: (0, 0)),
            pl.BlockSpec((1, t_p), lambda i: (0, 0)),
        ],
        out_specs=pl.BlockSpec((tb, t_p), lambda i: (i, 0)),
    )

    out_padded = pl.pallas_call(
        _make_kernel(t_dim),
        out_shape=jax.ShapeDtypeStruct((b_p, t_p), jnp.float32),
        grid_spec=grid_spec,
        compiler_params=pltpu.CompilerParams(
            dimension_semantics=("parallel",),  # megacore split on v7x
            vmem_limit_bytes=32 * 1024 * 1024,
        ),
    )(xp, w1p, b1p, w2p, b2p, w3p, b3p)

    return out_padded[:B, :t_dim]


def xavier_normal(key, fan_in, fan_out):
    # torch.nn.init.xavier_normal: std = sqrt(2 / (fan_in + fan_out))
    std = (2.0 / (fan_in + fan_out)) ** 0.5
    return jax.random.normal(key, (fan_in, fan_out), dtype=jnp.float32) * std


def reference_forward(x, w1, b1, w2, b2, w3, b3):
    h1 = jax.nn.relu(x @ w1 + b1)
    h2 = jax.nn.relu(h1 @ w2 + b2)
    return jax.nn.log_softmax(h2 @ w3 + b3, axis=-1)


if __name__ == "__main__":
    # Shapes consistent with the module's constructor:
    # VanillaNet(input_dim=32, hidden_size_1=64, hidden_size_2=32, target_size=8)
    batch, input_dim, hidden1, hidden2, target = 8, 32, 64, 32, 8

    key = jax.random.PRNGKey(0)
    kx, k1, k2, k3, kx2 = jax.random.split(key, 5)

    x = jax.random.normal(kx, (batch, input_dim), dtype=jnp.float32)

    # Weights: xavier_normal (deterministic via PRNGKey(0)); biases: constant 0
    # (matching the try/except in __init__: xavier_normal fails on 1-D biases).
    w1 = xavier_normal(k1, input_dim, hidden1)
    b1 = jnp.zeros((1, hidden1), dtype=jnp.float32)
    w2 = xavier_normal(k2, hidden1, hidden2)
    b2 = jnp.zeros((1, hidden2), dtype=jnp.float32)
    w3 = xavier_normal(k3, hidden2, target)
    b3 = jnp.zeros((1, target), dtype=jnp.float32)

    # Small run (single batch tile).
    out = vanilla_net_forward(x, w1, b1, w2, b2, w3, b3)
    out = jax.block_until_ready(out)
    ref = reference_forward(x, w1, b1, w2, b2, w3, b3)
    assert out.shape == (batch, target)
    assert jnp.allclose(out, ref, atol=1e-5, rtol=1e-5), "mismatch vs JAX reference (small)"

    # Larger run exercising the batch grid + partial-tile padding path.
    big_batch = 300
    x2 = jax.random.normal(kx2, (big_batch, input_dim), dtype=jnp.float32)
    out2 = vanilla_net_forward(x2, w1, b1, w2, b2, w3, b3, block_b=128)
    out2 = jax.block_until_ready(out2)
    ref2 = reference_forward(x2, w1, b1, w2, b2, w3, b3)
    assert out2.shape == (big_batch, target)
    assert jnp.allclose(out2, ref2, atol=1e-5, rtol=1e-5), "mismatch vs JAX reference (gridded)"

    print("KERNEL_OK")
</pallas_src>

<mosaic_0001>
module attributes {stable_mosaic.version = 11 : i64} {
  func.func @kernel(%arg0: i32, %arg1: memref<8x128xf32, #tpu.memory_space<vmem>>, %arg2: memref<128x128xf32, #tpu.memory_space<vmem>>, %arg3: memref<1x128xf32, #tpu.memory_space<vmem>>, %arg4: memref<128x128xf32, #tpu.memory_space<vmem>>, %arg5: memref<1x128xf32, #tpu.memory_space<vmem>>, %arg6: memref<128x128xf32, #tpu.memory_space<vmem>>, %arg7: memref<1x128xf32, #tpu.memory_space<vmem>>, %arg8: memref<8x128xf32, #tpu.memory_space<vmem>>) attributes {dimension_semantics = [#tpu.dimension_semantics<parallel>], iteration_bounds = array<i64: 1>, scalar_prefetch = 0 : i64, scratch_operands = 0 : i64, tpu.core_type = #tpu.core_type<tc>, window_params = [{transform_indices = @transform_0, window_bounds = array<i64: 8, 128>}, {pipeline_mode = #tpu.pipeline_mode<synchronous>, transform_indices = @transform_1, window_bounds = array<i64: 128, 128>}, {pipeline_mode = #tpu.pipeline_mode<synchronous>, transform_indices = @transform_2, window_bounds = array<i64: 1, 128>}, {pipeline_mode = #tpu.pipeline_mode<synchronous>, transform_indices = @transform_3, window_bounds = array<i64: 128, 128>}, {pipeline_mode = #tpu.pipeline_mode<synchronous>, transform_indices = @transform_4, window_bounds = array<i64: 1, 128>}, {pipeline_mode = #tpu.pipeline_mode<synchronous>, transform_indices = @transform_5, window_bounds = array<i64: 128, 128>}, {pipeline_mode = #tpu.pipeline_mode<synchronous>, transform_indices = @transform_6, window_bounds = array<i64: 1, 128>}, {transform_indices = @transform_7, window_bounds = array<i64: 8, 128>}]} {
    %c0 = arith.constant 0 : index
    %c0_0 = arith.constant 0 : index
    %0 = vector.load %arg1[%c0, %c0_0] : memref<8x128xf32, #tpu.memory_space<vmem>>, vector<8x128xf32>
    %c0_1 = arith.constant 0 : index
    %c0_2 = arith.constant 0 : index
    %1 = vector.load %arg2[%c0_1, %c0_2] : memref<128x128xf32, #tpu.memory_space<vmem>>, vector<128x128xf32>
    %cst = arith.constant dense<0.000000e+00> : vector<8x128xf32>
    %2 = tpu.matmul %0, %1, %cst {dimension_numbers = #tpu.dot_dimension_numbers<[1], [0], [0], [1], [0, 0, 1, 1], [], []>} : vector<8x128xf32>, vector<128x128xf32>, vector<8x128xf32> -> vector<8x128xf32>
    %c0_3 = arith.constant 0 : index
    %c0_4 = arith.constant 0 : index
    %3 = vector.load %arg3[%c0_3, %c0_4] : memref<1x128xf32, #tpu.memory_space<vmem>>, vector<1x128xf32>
    %4 = vector.broadcast %3 : vector<1x128xf32> to vector<8x128xf32>
    %5 = arith.addf %2, %4 : vector<8x128xf32>
    %cst_5 = arith.constant 0.000000e+00 : f32
    %6 = vector.broadcast %cst_5 : f32 to vector<8x128xf32>
    %7 = arith.maximumf %5, %6 : vector<8x128xf32>
    %c0_6 = arith.constant 0 : index
    %c0_7 = arith.constant 0 : index
    %8 = vector.load %arg4[%c0_6, %c0_7] : memref<128x128xf32, #tpu.memory_space<vmem>>, vector<128x128xf32>
    %cst_8 = arith.constant dense<0.000000e+00> : vector<8x128xf32>
    %9 = tpu.matmul %7, %8, %cst_8 {dimension_numbers = #tpu.dot_dimension_numbers<[1], [0], [0], [1], [0, 0, 1, 1], [], []>} : vector<8x128xf32>, vector<128x128xf32>, vector<8x128xf32> -> vector<8x128xf32>
    %c0_9 = arith.constant 0 : index
    %c0_10 = arith.constant 0 : index
    %10 = vector.load %arg5[%c0_9, %c0_10] : memref<1x128xf32, #tpu.memory_space<vmem>>, vector<1x128xf32>
    %11 = vector.broadcast %10 : vector<1x128xf32> to vector<8x128xf32>
    %12 = arith.addf %9, %11 : vector<8x128xf32>
    %cst_11 = arith.constant 0.000000e+00 : f32
    %13 = vector.broadcast %cst_11 : f32 to vector<8x128xf32>
    %14 = arith.maximumf %12, %13 : vector<8x128xf32>
    %c0_12 = arith.constant 0 : index
    %c0_13 = arith.constant 0 : index
    %15 = vector.load %arg6[%c0_12, %c0_13] : memref<128x128xf32, #tpu.memory_space<vmem>>, vector<128x128xf32>
    %cst_14 = arith.constant dense<0.000000e+00> : vector<8x128xf32>
    %16 = tpu.matmul %14, %15, %cst_14 {dimension_numbers = #tpu.dot_dimension_numbers<[1], [0], [0], [1], [0, 0, 1, 1], [], []>} : vector<8x128xf32>, vector<128x128xf32>, vector<8x128xf32> -> vector<8x128xf32>
    %c0_15 = arith.constant 0 : index
    %c0_16 = arith.constant 0 : index
    %17 = vector.load %arg7[%c0_15, %c0_16] : memref<1x128xf32, #tpu.memory_space<vmem>>, vector<1x128xf32>
    %18 = vector.broadcast %17 : vector<1x128xf32> to vector<8x128xf32>
    %19 = arith.addf %16, %18 : vector<8x128xf32>
    %20 = tpu.iota {dimensions = array<i32: 1>} : vector<8x128xi32>
    %c8_i32 = arith.constant 8 : i32
    %21 = vector.broadcast %c8_i32 : i32 to vector<8x128xi32>
    %22 = arith.cmpi slt, %20, %21 : vector<8x128xi32>
    %cst_17 = arith.constant 0xFF800000 : f32
    %23 = vector.broadcast %cst_17 : f32 to vector<8x128xf32>
    %24 = arith.select %22, %19, %23 : vector<8x128xi1>, vector<8x128xf32>
    %cst_18 = arith.constant dense<0xFF800000> : vector<8xf32>
    %25 = vector.multi_reduction <maximumf>, %24, %cst_18 [1] : vector<8x128xf32> to vector<8xf32>
    %26 = vector.shape_cast %25 : vector<8xf32> to vector<8x1xf32>
    %27 = vector.broadcast %26 : vector<8x1xf32> to vector<8x128xf32>
    %28 = arith.subf %24, %27 : vector<8x128xf32>
    %29 = math.exp %28 : vector<8x128xf32>
    %cst_19 = arith.constant dense<0.000000e+00> : vector<8xf32>
    %30 = vector.multi_reduction <add>, %29, %cst_19 [1] : vector<8x128xf32> to vector<8xf32>
    %31 = vector.shape_cast %30 : vector<8xf32> to vector<8x1xf32>
    %32 = math.log %31 : vector<8x1xf32>
    %33 = vector.broadcast %32 : vector<8x1xf32> to vector<8x128xf32>
    %34 = arith.subf %28, %33 : vector<8x128xf32>
    %c0_20 = arith.constant 0 : index
    %c0_21 = arith.constant 0 : index
    %35 = vector.load %arg8[%c0_20, %c0_21] : memref<8x128xf32, #tpu.memory_space<vmem>>, vector<8x128xf32>
    tpu.vector_store %arg8[%c0_20, %c0_21], %34 {strides = array<i32>} : memref<8x128xf32, #tpu.memory_space<vmem>>, vector<8x128xf32>,
    return
  }
  func.func @transform_0(%arg0: i32) -> (i32, i32) {
    %c0_i32 = arith.constant 0 : i32
    %c0_i32_0 = arith.constant 0 : i32
    return %arg0, %c0_i32 : i32, i32
  }
  func.func @transform_1(%arg0: i32) -> (i32, i32) {
    %c0_i32 = arith.constant 0 : i32
    %c0_i32_0 = arith.constant 0 : i32
    %c0_i32_1 = arith.constant 0 : i32
    return %c0_i32, %c0_i32_0 : i32, i32
  }
  func.func @transform_2(%arg0: i32) -> (i32, i32) {
    %c0_i32 = arith.constant 0 : i32
    %c0_i32_0 = arith.constant 0 : i32
    %c0_i32_1 = arith.constant 0 : i32
    return %c0_i32, %c0_i32_0 : i32, i32
  }
  func.func @transform_3(%arg0: i32) -> (i32, i32) {
    %c0_i32 = arith.constant 0 : i32
    %c0_i32_0 = arith.constant 0 : i32
    %c0_i32_1 = arith.constant 0 : i32
    return %c0_i32, %c0_i32_0 : i32, i32
  }
  func.func @transform_4(%arg0: i32) -> (i32, i32) {
    %c0_i32 = arith.constant 0 : i32
    %c0_i32_0 = arith.constant 0 : i32
    %c0_i32_1 = arith.constant 0 : i32
    return %c0_i32, %c0_i32_0 : i32, i32
  }
  func.func @transform_5(%arg0: i32) -> (i32, i32) {
    %c0_i32 = arith.constant 0 : i32
    %c0_i32_0 = arith.constant 0 : i32
    %c0_i32_1 = arith.constant 0 : i32
    return %c0_i32, %c0_i32_0 : i32, i32
  }
  func.func @transform_6(%arg0: i32) -> (i32, i32) {
    %c0_i32 = arith.constant 0 : i32
    %c0_i32_0 = arith.constant 0 : i32
    %c0_i32_1 = arith.constant 0 : i32
    return %c0_i32, %c0_i32_0 : i32, i32
  }
  func.func @transform_7(%arg0: i32) -> (i32, i32) {
    %c0_i32 = arith.constant 0 : i32
    %c0_i32_0 = arith.constant 0 : i32
    return %arg0, %c0_i32 : i32, i32
  }
}

</mosaic_0001>

<bundles_post_ra>
// kernel: tpu_custom_call.1
= control target key start
LH: loop header
LB: loop body
LE: loop exit
PB: predicated region body
PF: predicated region fallthrough
CT: control target
= control target key end

     0   :  { %12 = vsyncpa [#allocation3], 0  ;;  %s810_s0 = inlined_call_operand.hbm [shape: f32[8,128], index: 0, kind: input, shape index: {}]   ;;  %s811_s1 = inlined_call_operand.hbm [shape: f32[128,128], index: 1, kind: input, shape index: {}]   ;;  %s812_s2 = inlined_call_operand.vmem [shape: f32[1,128], index: 2, kind: input, shape index: {}]   ;;  %s813_s3 = inlined_call_operand.hbm [shape: f32[128,128], index: 3, kind: input, shape index: {}]   ;;  %s814_s4 = inlined_call_operand.vmem [shape: f32[1,128], index: 4, kind: input, shape index: {}]   ;;  %s815_s5 = inlined_call_operand.hbm [shape: f32[128,128], index: 5, kind: input, shape index: {}]   ;;  %s816_s6 = inlined_call_operand.vmem [shape: f32[1,128], index: 6, kind: input, shape index: {}]   ;;  %s817_s7 = inlined_call_operand.hbm [shape: f32[8,128], index: 7, kind: output, shape index: {}]  }
   0x1   :  { %13 = vsyncpa [#allocation6], 0 }
   0x2   :  { %14 = vsyncpa [#allocation9], 0 }
   0x3   :  { %15 = vsyncpa [#allocation4], 0  ;;  %s674_s24 = smov [#allocation5]  }
   0x4   :  { %s31_s25 = sshll.u32 %s674_s24, 4  ;;  %s32_s25 = int_to_ptr.vmem [resolvable:$true] %s31_s25 }
   0x5   :  { %s574_s26 = scalar_lea.vmem %s32_s25, 2048  ;;  %p579_p1 = scmp.lt.s32.totalorder %s32_s25, %s32_s25 }
   0x6   :  { %p575_p0 = scmp.ne.s32.totalorder %s32_s25, %s574_s26  ;;  %p580_p2 = scmp.lt.s32.totalorder %s574_s26, %s574_s26 }
   0x8   :  { %p581_p3 = por %p580_p2, %p579_p1 }
   0xa   :  { %p582_p4 = pnand %p581_p3, %p575_p0 }
   0xc   :  { %585 = shalt.err (!%p582_p4)
}
   0xd   :  { %s675_s27 = smov 128   ;;  %s676_s28 = smov 8  }
   0xe   :  { %37 = dma.hbm_to_vmem [thread:$0]  %s811_s1, 2048, %s32_s25, [#allocation6], %s675_s27, %s675_s27, %s676_s28  }
   0xf   :  { %s677_s8 = smov [#allocation2]   ;;  %s678_s10 = smov [#allocation7]  }
  0x10   :  { %s22_s9 = sshll.u32 %s677_s8, 4  ;;  %s45_s11 = sshll.u32 %s678_s10, 4  ;;  %s23_s9 = int_to_ptr.vmem [resolvable:$true] %s22_s9  ;;  %s46_s11 = int_to_ptr.vmem [resolvable:$true] %s45_s11 }
  0x11   :  { %s594_s12 = scalar_lea.vmem %s23_s9, 128  ;;  %p599_p6 = scmp.lt.s32.totalorder %s23_s9, %s23_s9 }
  0x12   :  { %p595_p5 = scmp.ne.s32.totalorder %s23_s9, %s594_s12  ;;  %p600_p7 = scmp.lt.s32.totalorder %s594_s12, %s594_s12 }
  0x14   :  { %p601_p8 = por %p600_p7, %p599_p6 }
  0x16   :  { %p602_p9 = pnand %p601_p8, %p595_p5 }
  0x18   :  { %605 = shalt.err (!%p602_p9)
}
  0x19   :  { %25 = dma.hbm_to_vmem [thread:$0]  %s810_s0, 128, %s23_s9, [#allocation3]  }
  0x1a   :  { %s614_s15 = scalar_lea.vmem %s46_s11, 2048  ;;  %p619_p11 = scmp.lt.s32.totalorder %s46_s11, %s46_s11 }
  0x1b   :  { %p615_p10 = scmp.ne.s32.totalorder %s46_s11, %s614_s15  ;;  %p620_p12 = scmp.lt.s32.totalorder %s614_s15, %s614_s15 }
  0x1d   :  { %p621_p13 = por %p620_p12, %p619_p11 }
  0x1f   :  { %p622_p0 = pnand %p621_p13, %p615_p10 }
  0x21   :  { %625 = shalt.err (!%p622_p0)
}
  0x22   :  { %51 = dma.hbm_to_vmem [thread:$0]  %s813_s3, 2048, %s46_s11, [#allocation6], %s675_s27, %s675_s27, %s676_s28  }
  0x23   :  { %s679_s17 = smov [#allocation8]  }
  0x24   :  { %s59_s18 = sshll.u32 %s679_s17, 4  ;;  %s60_s18 = int_to_ptr.vmem [resolvable:$true] %s59_s18 }
  0x25   :  { %s634_s19 = scalar_lea.vmem %s60_s18, 2048  ;;  %p639_p2 = scmp.lt.s32.totalorder %s60_s18, %s60_s18 }
  0x26   :  { %p635_p1 = scmp.ne.s32.totalorder %s60_s18, %s634_s19  ;;  %p640_p3 = scmp.lt.s32.totalorder %s634_s19, %s634_s19 }
  0x28   :  { %p641_p4 = por %p640_p3, %p639_p2 }
  0x2a   :  { %p642_p5 = pnand %p641_p4, %p635_p1 }
  0x2c   :  { %645 = shalt.err (!%p642_p5)
}
  0x2d   :  { %65 = dma.hbm_to_vmem [thread:$0]  %s815_s5, 2048, %s60_s18, [#allocation9], %s675_s27, %s675_s27, %s676_s28  }
  0x2e   :  { %666 = dma.done.wait [#allocation3], 128  }
  0x2f   :  { %667 = vsyncadd [#allocation3], 4294967168 }
  0x30   :  { %668 = dma.done.wait [#allocation6], 4096  }
  0x31   :  { %669 = vsyncadd [#allocation6], 4294963200 }
  0x32   :  { %670 = dma.done.wait [#allocation9], 2048  }
  0x33   :  { %671 = vsyncadd [#allocation9], 4294965248  ;;  %v680_v0 = vmov 0.0   ;;  %vm681_vm0 = vmmov 0   ;;  %v96_v1 = vld [vmem:[#allocation5 + $0x78] sm:$0xff]  ;;  %v95_v2 = vld [vmem:[#allocation5 + $0x70] sm:$0xff]  ;;  %v362_v60 = vlaneseq }
  0x34   :  { %448 = vmatprep.subr.mxu0 %v680_v0  ;;  %480 = vmatprep.mubr.msk.f32.mxu0 %vm681_vm0, %v680_v0  ;;  %v94_v3 = vld [vmem:[#allocation5 + $0x68] sm:$0xff]  ;;  %v93_v4 = vld [vmem:[#allocation5 + $0x60] sm:$0xff]  ;;  %v190_v5 = vld [vmem:[#allocation7 + $0x78] sm:$0xff] }
  0x35   :  { %483 = vmatprep.subr.mxu1 %v680_v0  ;;  %515 = vmatprep.mubr.msk.f32.mxu1 %vm681_vm0, %v680_v0  ;;  %v92_v6 = vld [vmem:[#allocation5 + $0x58] sm:$0xff]  ;;  %v189_v7 = vld [vmem:[#allocation7 + $0x70] sm:$0xff]  ;;  %v188_v8 = vld [vmem:[#allocation7 + $0x68] sm:$0xff]  ;;  %v363_v61 = vand.u32 127, %v362_v60 }
  0x36   :  { %449 = vmatpush3.msra.mxu0 %v96_v1  ;;  %484 = vmatpush3.msra.mxu1 %v190_v5  ;;  %v91_v9 = vld [vmem:[#allocation5 + $0x50] sm:$0xff]  ;;  %v187_v10 = vld [vmem:[#allocation7 + $0x60] sm:$0xff]  ;;  %v90_v11 = vld [vmem:[#allocation5 + $0x48] sm:$0xff] }
  0x37   :  { %450 = vmatprep.subr.mxu0 %v680_v0  ;;  %485 = vmatprep.subr.mxu1 %v680_v0  ;;  %v186_v12 = vld [vmem:[#allocation7 + $0x58] sm:$0xff]  ;;  %v89_v13 = vld [vmem:[#allocation5 + $0x40] sm:$0xff]  ;;  %v185_v14 = vld [vmem:[#allocation7 + $0x50] sm:$0xff]  ;;  %vm364_vm1 = vcmp.lt.s32.totalorder %v363_v61, 8 }
  0x38   :  { %451 = vmatpush3.msra.mxu0 %v95_v2  ;;  %486 = vmatpush3.msra.mxu1 %v189_v7  ;;  %v88_v15 = vld [vmem:[#allocation5 + $0x38] sm:$0xff]  ;;  %v184_v16 = vld [vmem:[#allocation7 + $0x48] sm:$0xff]  ;;  %v87_v17 = vld [vmem:[#allocation5 + $0x30] sm:$0xff] }
  0x39   :  { %452 = vmatprep.subr.mxu0 %v680_v0  ;;  %487 = vmatprep.subr.mxu1 %v680_v0  ;;  %v183_v18 = vld [vmem:[#allocation7 + $0x40] sm:$0xff]  ;;  %v86_v19 = vld [vmem:[#allocation5 + $0x28] sm:$0xff]  ;;  %v182_v20 = vld [vmem:[#allocation7 + $0x38] sm:$0xff] }
  0x3a   :  { %453 = vmatpush3.msra.mxu0 %v94_v3  ;;  %488 = vmatpush3.msra.mxu1 %v188_v8  ;;  %v85_v21 = vld [vmem:[#allocation5 + $0x20] sm:$0xff]  ;;  %v181_v22 = vld [vmem:[#allocation7 + $0x30] sm:$0xff]  ;;  %v84_v23 = vld [vmem:[#allocation5 + $0x18] sm:$0xff] }
  0x3b   :  { %454 = vmatprep.subr.mxu0 %v680_v0  ;;  %489 = vmatprep.subr.mxu1 %v680_v0  ;;  %v180_v24 = vld [vmem:[#allocation7 + $0x28] sm:$0xff]  ;;  %v83_v25 = vld [vmem:[#allocation5 + $0x10] sm:$0xff]  ;;  %v179_v26 = vld [vmem:[#allocation7 + $0x20] sm:$0xff] }
  0x3c   :  { %455 = vmatpush3.msra.mxu0 %v93_v4  ;;  %490 = vmatpush3.msra.mxu1 %v187_v10  ;;  %v82_v27 = vld [vmem:[#allocation5 + $0x8] sm:$0xff]  ;;  %v178_v28 = vld [vmem:[#allocation7 + $0x18] sm:$0xff]  ;;  %v81_v29 = vld [vmem:[#allocation5] sm:$0xff] }
  0x3d   :  { %456 = vmatprep.subr.mxu0 %v680_v0  ;;  %491 = vmatprep.subr.mxu1 %v680_v0  ;;  %v80_v30 = vld [vmem:[#allocation2] sm:$0xff]  ;;  %v177_v31 = vld [vmem:[#allocation7 + $0x10] sm:$0xff]  ;;  %v176_v32 = vld [vmem:[#allocation7 + $0x8] sm:$0xff] }
  0x3e   :  { %457 = vmatpush3.msra.mxu0 %v92_v6  ;;  %492 = vmatpush3.msra.mxu1 %v186_v12  ;;  %v175_v33 = vld [vmem:[#allocation7] sm:$0xff]  ;;  %v284_v34 = vld [vmem:[#allocation8 + $0x78] sm:$0xff]  ;;  %v283_v35 = vld [vmem:[#allocation8 + $0x70] sm:$0xff] }
  0x3f   :  { %458 = vmatprep.subr.mxu0 %v680_v0  ;;  %493 = vmatprep.subr.mxu1 %v680_v0  ;;  %v282_v36 = vld [vmem:[#allocation8 + $0x68] sm:$0xff]  ;;  %v281_v37 = vld [vmem:[#allocation8 + $0x60] sm:$0xff]  ;;  %v280_v38 = vld [vmem:[#allocation8 + $0x58] sm:$0xff] }
  0x40   :  { %459 = vmatpush3.msra.mxu0 %v91_v9  ;;  %494 = vmatpush3.msra.mxu1 %v185_v14  ;;  %v279_v39 = vld [vmem:[#allocation8 + $0x50] sm:$0xff]  ;;  %v278_v40 = vld [vmem:[#allocation8 + $0x48] sm:$0xff]  ;;  %v277_v41 = vld [vmem:[#allocation8 + $0x40] sm:$0xff] }
  0x41   :  { %460 = vmatprep.subr.mxu0 %v680_v0  ;;  %495 = vmatprep.subr.mxu1 %v680_v0  ;;  %v276_v42 = vld [vmem:[#allocation8 + $0x38] sm:$0xff]  ;;  %v275_v43 = vld [vmem:[#allocation8 + $0x30] sm:$0xff]  ;;  %v274_v44 = vld [vmem:[#allocation8 + $0x28] sm:$0xff] }
  0x42   :  { %461 = vmatpush3.msra.mxu0 %v90_v11  ;;  %496 = vmatpush3.msra.mxu1 %v184_v16  ;;  %v273_v45 = vld [vmem:[#allocation8 + $0x20] sm:$0xff]  ;;  %v272_v46 = vld [vmem:[#allocation8 + $0x18] sm:$0xff]  ;;  %v271_v52 = vld [vmem:[#allocation8 + $0x10] sm:$0xff] }
  0x43   :  { %462 = vmatprep.subr.mxu0 %v680_v0  ;;  %497 = vmatprep.subr.mxu1 %v680_v0  ;;  %v394_v47 = vld [vmem:[%s812_s2] ss:$0 sm:$0xff]  ;;  %v270_v53 = vld [vmem:[#allocation8 + $0x8] sm:$0xff]  ;;  %v269_v54 = vld [vmem:[#allocation8] sm:$0xff] }
  0x44   :  { %463 = vmatpush3.msra.mxu0 %v89_v13  ;;  %498 = vmatpush3.msra.mxu1 %v183_v18  ;;  %v395_v55 = vld [vmem:[%s814_s4] ss:$0 sm:$0xff]  ;;  %s682_s4 = smov [#allocation10]  }
  0x45   :  { %464 = vmatprep.subr.mxu0 %v680_v0  ;;  %499 = vmatprep.subr.mxu1 %v680_v0  ;;  %v396_v62 = vld [vmem:[%s816_s6] ss:$0 sm:$0xff]  ;;  %s383_s24 = sshll.u32 %s682_s4, 4  ;;  %s384_s24 = int_to_ptr.vmem [resolvable:$true] %s383_s24 }
  0x46   :  { %465 = vmatpush3.msra.mxu0 %v88_v15  ;;  %500 = vmatpush3.msra.mxu1 %v182_v20  ;;  %s646_s6 = scalar_lea.vmem %s384_s24, 128  ;;  %p651_p7 = scmp.lt.s32.totalorder %s384_s24, %s384_s24 }
  0x47   :  { %466 = vmatprep.subr.mxu0 %v680_v0  ;;  %501 = vmatprep.subr.mxu1 %v680_v0  ;;  %p647_p6 = scmp.ne.s32.totalorder %s384_s24, %s646_s6  ;;  %p652_p8 = scmp.lt.s32.totalorder %s646_s6, %s646_s6 }
  0x48   :  { %467 = vmatpush3.msra.mxu0 %v87_v17  ;;  %502 = vmatpush3.msra.mxu1 %v181_v22 }
  0x49   :  { %468 = vmatprep.subr.mxu0 %v680_v0  ;;  %503 = vmatprep.subr.mxu1 %v680_v0  ;;  %p653_p9 = por %p652_p8, %p651_p7 }
  0x4a   :  { %469 = vmatpush3.msra.mxu0 %v86_v19  ;;  %504 = vmatpush3.msra.mxu1 %v180_v24 }
  0x4b   :  { %470 = vmatprep.subr.mxu0 %v680_v0  ;;  %505 = vmatprep.subr.mxu1 %v680_v0  ;;  %p654_p10 = pnand %p653_p9, %p647_p6 }
  0x4c   :  { %471 = vmatpush3.msra.mxu0 %v85_v21  ;;  %506 = vmatpush3.msra.mxu1 %v179_v26 }
  0x4d   :  { %472 = vmatprep.subr.mxu0 %v680_v0  ;;  %507 = vmatprep.subr.mxu1 %v680_v0 }
  0x4e   :  { %473 = vmatpush3.msra.mxu0 %v84_v23  ;;  %508 = vmatpush3.msra.mxu1 %v178_v28 }
  0x4f   :  { %474 = vmatprep.subr.mxu0 %v680_v0  ;;  %509 = vmatprep.subr.mxu1 %v680_v0 }
  0x50   :  { %475 = vmatpush3.msra.mxu0 %v83_v25  ;;  %510 = vmatpush3.msra.mxu1 %v177_v31 }
  0x51   :  { %476 = vmatprep.subr.mxu0 %v680_v0  ;;  %511 = vmatprep.subr.mxu1 %v680_v0 }
  0x52   :  { %477 = vmatpush3.msra.mxu0 %v82_v27  ;;  %512 = vmatpush3.msra.mxu1 %v176_v32 }
  0x53   :  { %478 = vmatprep.subr.mxu0 %v680_v0  ;;  %513 = vmatprep.subr.mxu1 %v680_v0 }
  0x54   :  { %479 = vmatpush3.msra.mxu0 %v81_v29  ;;  %514 = vmatpush3.msra.mxu1 %v175_v33 }
  0x55   :  { %481 = vmatmul.mubr.f32.vlgmr.msra.gmra.mxu0 %v80_v30  ;;  %518 = vmatprep.subr.mxu0 %v680_v0 }
  0x56   :  { %550 = vmatprep.mubr.msk.f32.mxu0 %vm681_vm0, %v680_v0  ;;  %519 = vmatpush3.msra.mxu0 %v284_v34 }
  0x57   :  { %520 = vmatprep.subr.mxu0 %v680_v0 }
  0x58   :  { %521 = vmatpush3.msra.mxu0 %v283_v35 }
  0x59   :  { %522 = vmatprep.subr.mxu0 %v680_v0 }
  0x5a   :  { %523 = vmatpush3.msra.mxu0 %v282_v36 }
  0x5b   :  { %524 = vmatprep.subr.mxu0 %v680_v0 }
  0x5c   :  { %525 = vmatpush3.msra.mxu0 %v281_v37 }
  0x5d   :  { %526 = vmatprep.subr.mxu0 %v680_v0 }
  0x5e   :  { %527 = vmatpush3.msra.mxu0 %v280_v38 }
  0x5f   :  { %528 = vmatprep.subr.mxu0 %v680_v0 }
  0x60   :  { %529 = vmatpush3.msra.mxu0 %v279_v39 }
  0x61   :  { %530 = vmatprep.subr.mxu0 %v680_v0 }
  0x62   :  { %531 = vmatpush3.msra.mxu0 %v278_v40 }
  0x63   :  { %532 = vmatprep.subr.mxu0 %v680_v0 }
  0x64   :  { %533 = vmatpush3.msra.mxu0 %v277_v41 }
  0x65   :  { %534 = vmatprep.subr.mxu0 %v680_v0 }
  0x66   :  { %535 = vmatpush3.msra.mxu0 %v276_v42 }
  0x67   :  { %536 = vmatprep.subr.mxu0 %v680_v0 }
  0x68   :  { %537 = vmatpush3.msra.mxu0 %v275_v43 }
  0x69   :  { %538 = vmatprep.subr.mxu0 %v680_v0 }
  0x6a   :  { %539 = vmatpush3.msra.mxu0 %v274_v44 }
  0x6b   :  { %540 = vmatprep.subr.mxu0 %v680_v0 }
  0x6c   :  { %541 = vmatpush3.msra.mxu0 %v273_v45 }
  0x6d   :  { %542 = vmatprep.subr.mxu0 %v680_v0 }
  0x6e   :  { %543 = vmatpush3.msra.mxu0 %v272_v46 }
  0x6f   :  { %544 = vmatprep.subr.mxu0 %v680_v0 }
  0x70   :  { %545 = vmatpush3.msra.mxu0 %v271_v52 }
  0x71   :  { %546 = vmatprep.subr.mxu0 %v680_v0 }
  0x72   :  { %547 = vmatpush3.msra.mxu0 %v270_v53 }
  0x73   :  { %548 = vmatprep.subr.mxu0 %v680_v0 }
  0x74   :  { %549 = vmatpush3.msra.mxu0 %v269_v54 }
 0x115   :  { %v170_v48 = vpop.f32.mrf.mxu0 }
 0x116   :  { %v171_v49 = vadd.f32 %v394_v47, %v170_v48 }
 0x117   :  { %v482_v50 = vpop.f32.mrf.mxu0 }
 0x118   :  { %v174_v51 = vmax.f32 %v171_v49, 0.0 }
 0x11a   :  { %516 = vmatmul.mubr.f32.vlgmr.msra.gmra.mxu1 %v174_v51 }
 0x1da   :  { %v264_v56 = vpop.f32.mrf.mxu1 }
 0x1db   :  { %v265_v57 = vadd.f32 %v395_v55, %v264_v56 }
 0x1dc   :  { %v517_v58 = vpop.f32.mrf.mxu1 }
 0x1dd   :  { %v268_v59 = vmax.f32 %v265_v57, 0.0 }
 0x1df   :  { %551 = vmatmul.mubr.f32.vlgmr.msra.gmra.mxu0 %v268_v59 }
 0x29f   :  { %v358_v63 = vpop.f32.mrf.mxu0 }
 0x2a0   :  { %v359_v0 = vadd.f32 %v396_v62, %v358_v63 }
 0x2a1   :  { %v552_v1 = vpop.f32.mrf.mxu0 }
 0x2a2   :  { %v365_v2 = vsel %vm364_vm1, %v359_v0, -inf }
 0x2a3   :  { %366 = vmax.xlane.f32.xlu0 %v365_v2 }
 0x32c   :  { %v367_v3 = vpop.xlane.xlu0 %366 }
 0x32d   :  { %v368_v4 = vsub.f32 %v365_v2, %v367_v3 }
 0x32f   :  { %v369_v5 = vmul.f32 1.442695, %v368_v4 }
 0x331   :  { %562 = vpow2.f32 %v369_v5 }
 0x33e   :  { %v563_v6 = vpop.eup %562 }
 0x33f   :  { %371 = vadd.xlane.f32.xlu0 %v563_v6 }
 0x3c8   :  { %v372_v7 = vpop.xlane.xlu0 %371 }
 0x3c9   :  { %564 = vlog2.f32 %v372_v7 }
 0x3d6   :  { %v565_v8 = vpop.eup %564 }
 0x3d7   :  { %v374_v9 = vmul.f32 0.6931472, %v565_v8 }
 0x3d9   :  { %v375_v10 = vsub.f32 %v368_v4, %v374_v9 }
 0x3db   :  { %376 = vst [vmem:[#allocation10] sm:$0xff] %v375_v10 }
 0x3dc   :  { %657 = shalt.err (!%p654_p10)
}
 0x3dd   :  { %386 = dma.vmem_to_hbm [thread:$0]  %s384_s24, 128, %s817_s7, [#allocation4]  }
 0x3de   :  { %672 = dma.done.wait [#allocation4], 128  }
 0x3df   :  { %673 = vsyncadd [#allocation4], 4294967168 }
 0x3e0   :  { %390 = vsyncpa [#allocation3], 1 }
 0x3e1   :  { %391 = vsyncpa [#allocation6], 1 }
 0x3e2   :  { %392 = vsyncpa [#allocation9], 1 }
 0x3e3   :  { %393 = vsyncpa [#allocation4], 1 }

</bundles_post_ra>
